<compile_context>
chip_gen: v7x
topology: tpu7x:2x2x1
jax: 0.10.0
libtpu: 0.0.40
codegen_flags: <defaults>
</compile_context>

<pallas_src>
import functools

import jax
import jax.numpy as jnp
from jax.experimental import pallas as pl
from jax.experimental.pallas import tpu as pltpu

IN_FEATURES = 100
H1, H2, H3 = 256, 256, 128
N_OUT = 10
OUT_PAD = 128          # output padded 10 -> 128 (lane-dense, unmasked stores)
MAX_TILE_B = 1024      # per review: 1024 amortizes step overhead, VMEM-safe


def _round_up(n, m):
    return ((n + m - 1) // m) * m


def _choose_tiling(B):
    """Pick (tile_b, b_pad). Small batches: one minimal 16-aligned tile.
    Large batches: 256-aligned tiles capped at MAX_TILE_B, >= 2 tiles so the
    'parallel' batch axis can shard across both v7x TensorCores."""
    b16 = _round_up(B, 16)                      # 16: bf16 sublane packing
    if b16 <= 512:
        return b16, b16
    tile_b = min(MAX_TILE_B, _round_up(pl.cdiv(b16, 2), 256))
    return tile_b, _round_up(b16, tile_b)


def _fused_mlp_kernel(x_ref, w1_ref, b1_ref, w2_ref, b2_ref,
                      w3_ref, b3_ref, wo_ref, bo_ref, o_ref):
    # layer1: Linear(100->256) + ReLU  (f32 x cast to bf16 in-kernel; K=100
    # is padded by Mosaic with negligible MXU cost)
    x = x_ref[...].astype(jnp.bfloat16)
    h = jnp.dot(x, w1_ref[...], preferred_element_type=jnp.float32)
    h = jnp.maximum(h + b1_ref[...], 0.0)
    # layer2: Linear(256->256) + ReLU
    h = jnp.dot(h.astype(jnp.bfloat16), w2_ref[...],
                preferred_element_type=jnp.float32)
    h = jnp.maximum(h + b2_ref[...], 0.0)
    # layer3: Linear(256->128) + ReLU
    h = jnp.dot(h.astype(jnp.bfloat16), w3_ref[...],
                preferred_element_type=jnp.float32)
    h = jnp.maximum(h + b3_ref[...], 0.0)
    # output_layer: Linear(128->128 padded), no activation; f32 accumulate +
    # bias, then narrow to bf16 for the lane-dense store (halves output bytes).
    o = jnp.dot(h.astype(jnp.bfloat16), wo_ref[...],
                preferred_element_type=jnp.float32)
    o_ref[...] = (o + bo_ref[...]).astype(o_ref.dtype)


def _const_spec(shape):
    # Whole-array block, same block every grid step -> stays VMEM-resident.
    # (Default double-buffering of these ~300 KB operands is negligible, so we
    # skip pl.Buffered(1) to keep the lowering maximally portable.)
    return pl.BlockSpec(shape, lambda i: tuple(0 for _ in shape))


@functools.partial(jax.jit, static_argnums=(0,))
def _pallas_forward(tile_b, x_pad, w1, b1, w2, b2, w3, b3, wo, bo):
    b_pad = x_pad.shape[0]
    n_tiles = b_pad // tile_b

    flops = 2 * b_pad * (IN_FEATURES * H1 + H1 * H2 + H2 * H3 + H3 * OUT_PAD)
    bytes_accessed = (
        b_pad * IN_FEATURES * 4                                      # x (f32)
        + (IN_FEATURES * H1 + H1 * H2 + H2 * H3 + H3 * OUT_PAD) * 2  # W (bf16)
        + (H1 + H2 + H3 + OUT_PAD) * 4                               # b (f32)
        + b_pad * OUT_PAD * 2                                        # out (bf16)
    )

    return pl.pallas_call(
        _fused_mlp_kernel,
        out_shape=jax.ShapeDtypeStruct((b_pad, OUT_PAD), jnp.bfloat16),
        grid=(n_tiles,),
        in_specs=[
            pl.BlockSpec((tile_b, IN_FEATURES), lambda i: (i, 0)),  # x (tiled)
            _const_spec((IN_FEATURES, H1)),                         # w1
            _const_spec((1, H1)),                                   # b1
            _const_spec((H1, H2)),                                  # w2
            _const_spec((1, H2)),                                   # b2
            _const_spec((H2, H3)),                                  # w3
            _const_spec((1, H3)),                                   # b3
            _const_spec((H3, OUT_PAD)),                             # wo (padded)
            _const_spec((1, OUT_PAD)),                              # bo (padded)
        ],
        out_specs=pl.BlockSpec((tile_b, OUT_PAD), lambda i: (i, 0)),
        compiler_params=pltpu.CompilerParams(
            dimension_semantics=("parallel",),
            vmem_limit_bytes=32 * 1024 * 1024,
        ),
        cost_estimate=pl.CostEstimate(
            flops=flops, transcendentals=0, bytes_accessed=bytes_accessed),
    )(x_pad, w1, b1, w2, b2, w3, b3, wo, bo)


def prepare_params(params):
    """One-time padding / bf16 casting of the logical params (hoisted out of
    the per-call forward path)."""
    w1, b1, w2, b2, w3, b3, wo, bo = params
    wo_p = jnp.pad(wo.astype(jnp.bfloat16), ((0, 0), (0, OUT_PAD - wo.shape[1])))
    bo_p = jnp.pad(bo, ((0, 0), (0, OUT_PAD - bo.shape[1])))
    return (w1.astype(jnp.bfloat16), b1,
            w2.astype(jnp.bfloat16), b2,
            w3.astype(jnp.bfloat16), b3,
            wo_p, bo_p)


def dynamic_nn_forward(x, prepared_params, complexities):
    """Pallas-backed forward pass of DynamicNeuralNetwork.

    `prepared_params` come from prepare_params(); x is (B, 100) f32.
    """
    if not (complexities['variance'] and complexities['entropy']
            and (not complexities['sparsity'])):
        # TODO(synk): else-branch (layer1->layer2->output_layer) is
        # shape-inconsistent in the reference model (256 -> Linear(128, 10)).
        raise ValueError("else-branch routing is shape-inconsistent in the "
                         "reference model (256 -> Linear(128, 10)).")

    B, F = x.shape
    assert F == IN_FEATURES, F
    tile_b, b_pad = _choose_tiling(B)

    # Only glue left in the call path: zero-pad the batch dim (exact).
    x_p = x if b_pad == B else jnp.pad(x, ((0, b_pad - B), (0, 0)))

    out = _pallas_forward(tile_b, x_p, *prepared_params)
    # Slice off padding; cast the (B, 10) logits back to f32 (tiny).
    return out[:B, :N_OUT].astype(jnp.float32)


def init_params(key):
    """nn.Linear-style init (uniform +/- 1/sqrt(fan_in)).

    Weights stored as (in_features, out_features) = torch weight transposed;
    biases stored as (1, out_features). Kept in f32 (master copy)."""
    dims = [(IN_FEATURES, H1), (H1, H2), (H2, H3), (H3, N_OUT)]
    params = []
    for (fan_in, fan_out) in dims:
        key, kw, kb = jax.random.split(key, 3)
        bound = 1.0 / jnp.sqrt(jnp.float32(fan_in))
        w = jax.random.uniform(kw, (fan_in, fan_out), jnp.float32,
                               minval=-bound, maxval=bound)
        b = jax.random.uniform(kb, (1, fan_out), jnp.float32,
                               minval=-bound, maxval=bound)
        params.extend([w, b])
    return tuple(params)


def reference_forward(x, params):
    """Pure-JAX reference with the same bf16-operand / f32-accumulate math."""
    w1, b1, w2, b2, w3, b3, wo, bo = params

    def lin(h, w, b):
        return jnp.dot(h.astype(jnp.bfloat16), w.astype(jnp.bfloat16),
                       preferred_element_type=jnp.float32) + b

    h = jnp.maximum(lin(x, w1, b1), 0.0)
    h = jnp.maximum(lin(h, w2, b2), 0.0)
    h = jnp.maximum(lin(h, w3, b3), 0.0)
    return lin(h, wo, bo)


if __name__ == "__main__":
    key = jax.random.PRNGKey(0)
    key, kx = jax.random.split(key)

    B = 2
    x = jax.random.normal(kx, (B, IN_FEATURES), jnp.float32)
    params = init_params(key)
    prepared = prepare_params(params)

    complexities = {"variance": True, "entropy": True, "sparsity": False}

    out = dynamic_nn_forward(x, prepared, complexities)
    out = jax.block_until_ready(out)

    ref = reference_forward(x, params)
    assert out.shape == (B, N_OUT), out.shape
    # Final store is bf16 (perf), so allow ~bf16 ulp of slack on the logits.
    assert jnp.allclose(out, ref, atol=2e-2, rtol=2e-2), \
        float(jnp.max(jnp.abs(out - ref)))

    print("KERNEL_OK")
</pallas_src>

<mosaic_0001>
module attributes {stable_mosaic.version = 11 : i64} {
  func.func @_fused_mlp_kernel(%arg0: i32, %arg1: memref<16x100xf32, #tpu.memory_space<vmem>>, %arg2: memref<100x256xbf16, #tpu.memory_space<vmem>>, %arg3: memref<1x256xf32, #tpu.memory_space<vmem>>, %arg4: memref<256x256xbf16, #tpu.memory_space<vmem>>, %arg5: memref<1x256xf32, #tpu.memory_space<vmem>>, %arg6: memref<256x128xbf16, #tpu.memory_space<vmem>>, %arg7: memref<1x128xf32, #tpu.memory_space<vmem>>, %arg8: memref<128x128xbf16, #tpu.memory_space<vmem>>, %arg9: memref<1x128xf32, #tpu.memory_space<vmem>>, %arg10: memref<16x128xbf16, #tpu.memory_space<vmem>>) attributes {dimension_semantics = [#tpu.dimension_semantics<parallel>], iteration_bounds = array<i64: 1>, scalar_prefetch = 0 : i64, scratch_operands = 0 : i64, tpu.core_type = #tpu.core_type<tc>, window_params = [{transform_indices = @transform_0, window_bounds = array<i64: 16, 100>}, {pipeline_mode = #tpu.pipeline_mode<synchronous>, transform_indices = @transform_1, window_bounds = array<i64: 100, 256>}, {pipeline_mode = #tpu.pipeline_mode<synchronous>, transform_indices = @transform_2, window_bounds = array<i64: 1, 256>}, {pipeline_mode = #tpu.pipeline_mode<synchronous>, transform_indices = @transform_3, window_bounds = array<i64: 256, 256>}, {pipeline_mode = #tpu.pipeline_mode<synchronous>, transform_indices = @transform_4, window_bounds = array<i64: 1, 256>}, {pipeline_mode = #tpu.pipeline_mode<synchronous>, transform_indices = @transform_5, window_bounds = array<i64: 256, 128>}, {pipeline_mode = #tpu.pipeline_mode<synchronous>, transform_indices = @transform_6, window_bounds = array<i64: 1, 128>}, {pipeline_mode = #tpu.pipeline_mode<synchronous>, transform_indices = @transform_7, window_bounds = array<i64: 128, 128>}, {pipeline_mode = #tpu.pipeline_mode<synchronous>, transform_indices = @transform_8, window_bounds = array<i64: 1, 128>}, {transform_indices = @transform_9, window_bounds = array<i64: 16, 128>}]} {
    %c0 = arith.constant 0 : index
    %c0_0 = arith.constant 0 : index
    %0 = vector.load %arg1[%c0, %c0_0] : memref<16x100xf32, #tpu.memory_space<vmem>>, vector<16x100xf32>
    %1 = arith.truncf %0 : vector<16x100xf32> to vector<16x100xbf16>
    %c0_1 = arith.constant 0 : index
    %c0_2 = arith.constant 0 : index
    %2 = vector.load %arg2[%c0_1, %c0_2] : memref<100x256xbf16, #tpu.memory_space<vmem>>, vector<100x256xbf16>
    %cst = arith.constant dense<0.000000e+00> : vector<16x256xf32>
    %3 = tpu.matmul %1, %2, %cst {dimension_numbers = #tpu.dot_dimension_numbers<[1], [0], [0], [1], [0, 0, 1, 1], [], []>} : vector<16x100xbf16>, vector<100x256xbf16>, vector<16x256xf32> -> vector<16x256xf32>
    %c0_3 = arith.constant 0 : index
    %c0_4 = arith.constant 0 : index
    %4 = vector.load %arg3[%c0_3, %c0_4] : memref<1x256xf32, #tpu.memory_space<vmem>>, vector<1x256xf32>
    %5 = vector.broadcast %4 : vector<1x256xf32> to vector<16x256xf32>
    %6 = arith.addf %3, %5 : vector<16x256xf32>
    %cst_5 = arith.constant 0.000000e+00 : f32
    %7 = vector.broadcast %cst_5 : f32 to vector<16x256xf32>
    %8 = arith.maximumf %6, %7 : vector<16x256xf32>
    %9 = arith.truncf %8 : vector<16x256xf32> to vector<16x256xbf16>
    %c0_6 = arith.constant 0 : index
    %c0_7 = arith.constant 0 : index
    %10 = vector.load %arg4[%c0_6, %c0_7] : memref<256x256xbf16, #tpu.memory_space<vmem>>, vector<256x256xbf16>
    %cst_8 = arith.constant dense<0.000000e+00> : vector<16x256xf32>
    %11 = tpu.matmul %9, %10, %cst_8 {dimension_numbers = #tpu.dot_dimension_numbers<[1], [0], [0], [1], [0, 0, 1, 1], [], []>} : vector<16x256xbf16>, vector<256x256xbf16>, vector<16x256xf32> -> vector<16x256xf32>
    %c0_9 = arith.constant 0 : index
    %c0_10 = arith.constant 0 : index
    %12 = vector.load %arg5[%c0_9, %c0_10] : memref<1x256xf32, #tpu.memory_space<vmem>>, vector<1x256xf32>
    %13 = vector.broadcast %12 : vector<1x256xf32> to vector<16x256xf32>
    %14 = arith.addf %11, %13 : vector<16x256xf32>
    %cst_11 = arith.constant 0.000000e+00 : f32
    %15 = vector.broadcast %cst_11 : f32 to vector<16x256xf32>
    %16 = arith.maximumf %14, %15 : vector<16x256xf32>
    %17 = arith.truncf %16 : vector<16x256xf32> to vector<16x256xbf16>
    %c0_12 = arith.constant 0 : index
    %c0_13 = arith.constant 0 : index
    %18 = vector.load %arg6[%c0_12, %c0_13] : memref<256x128xbf16, #tpu.memory_space<vmem>>, vector<256x128xbf16>
    %cst_14 = arith.constant dense<0.000000e+00> : vector<16x128xf32>
    %19 = tpu.matmul %17, %18, %cst_14 {dimension_numbers = #tpu.dot_dimension_numbers<[1], [0], [0], [1], [0, 0, 1, 1], [], []>} : vector<16x256xbf16>, vector<256x128xbf16>, vector<16x128xf32> -> vector<16x128xf32>
    %c0_15 = arith.constant 0 : index
    %c0_16 = arith.constant 0 : index
    %20 = vector.load %arg7[%c0_15, %c0_16] : memref<1x128xf32, #tpu.memory_space<vmem>>, vector<1x128xf32>
    %21 = vector.broadcast %20 : vector<1x128xf32> to vector<16x128xf32>
    %22 = arith.addf %19, %21 : vector<16x128xf32>
    %cst_17 = arith.constant 0.000000e+00 : f32
    %23 = vector.broadcast %cst_17 : f32 to vector<16x128xf32>
    %24 = arith.maximumf %22, %23 : vector<16x128xf32>
    %25 = arith.truncf %24 : vector<16x128xf32> to vector<16x128xbf16>
    %c0_18 = arith.constant 0 : index
    %c0_19 = arith.constant 0 : index
    %26 = vector.load %arg8[%c0_18, %c0_19] : memref<128x128xbf16, #tpu.memory_space<vmem>>, vector<128x128xbf16>
    %cst_20 = arith.constant dense<0.000000e+00> : vector<16x128xf32>
    %27 = tpu.matmul %25, %26, %cst_20 {dimension_numbers = #tpu.dot_dimension_numbers<[1], [0], [0], [1], [0, 0, 1, 1], [], []>} : vector<16x128xbf16>, vector<128x128xbf16>, vector<16x128xf32> -> vector<16x128xf32>
    %c0_21 = arith.constant 0 : index
    %c0_22 = arith.constant 0 : index
    %28 = vector.load %arg9[%c0_21, %c0_22] : memref<1x128xf32, #tpu.memory_space<vmem>>, vector<1x128xf32>
    %29 = vector.broadcast %28 : vector<1x128xf32> to vector<16x128xf32>
    %30 = arith.addf %27, %29 : vector<16x128xf32>
    %31 = arith.truncf %30 : vector<16x128xf32> to vector<16x128xbf16>
    %c0_23 = arith.constant 0 : index
    %c0_24 = arith.constant 0 : index
    %32 = vector.load %arg10[%c0_23, %c0_24] : memref<16x128xbf16, #tpu.memory_space<vmem>>, vector<16x128xbf16>
    tpu.vector_store %arg10[%c0_23, %c0_24], %31 {strides = array<i32>} : memref<16x128xbf16, #tpu.memory_space<vmem>>, vector<16x128xbf16>,
    return
  }
  func.func @transform_0(%arg0: i32) -> (i32, i32) {
    %c0_i32 = arith.constant 0 : i32
    %c0_i32_0 = arith.constant 0 : i32
    return %arg0, %c0_i32 : i32, i32
  }
  func.func @transform_1(%arg0: i32) -> (i32, i32) {
    %c0_i32 = arith.constant 0 : i32
    %c0_i32_0 = arith.constant 0 : i32
    %c0_i32_1 = arith.constant 0 : i32
    return %c0_i32, %c0_i32_0 : i32, i32
  }
  func.func @transform_2(%arg0: i32) -> (i32, i32) {
    %c0_i32 = arith.constant 0 : i32
    %c0_i32_0 = arith.constant 0 : i32
    %c0_i32_1 = arith.constant 0 : i32
    return %c0_i32, %c0_i32_0 : i32, i32
  }
  func.func @transform_3(%arg0: i32) -> (i32, i32) {
    %c0_i32 = arith.constant 0 : i32
    %c0_i32_0 = arith.constant 0 : i32
    %c0_i32_1 = arith.constant 0 : i32
    return %c0_i32, %c0_i32_0 : i32, i32
  }
  func.func @transform_4(%arg0: i32) -> (i32, i32) {
    %c0_i32 = arith.constant 0 : i32
    %c0_i32_0 = arith.constant 0 : i32
    %c0_i32_1 = arith.constant 0 : i32
    return %c0_i32, %c0_i32_0 : i32, i32
  }
  func.func @transform_5(%arg0: i32) -> (i32, i32) {
    %c0_i32 = arith.constant 0 : i32
    %c0_i32_0 = arith.constant 0 : i32
    %c0_i32_1 = arith.constant 0 : i32
    return %c0_i32, %c0_i32_0 : i32, i32
  }
  func.func @transform_6(%arg0: i32) -> (i32, i32) {
    %c0_i32 = arith.constant 0 : i32
    %c0_i32_0 = arith.constant 0 : i32
    %c0_i32_1 = arith.constant 0 : i32
    return %c0_i32, %c0_i32_0 : i32, i32
  }
  func.func @transform_7(%arg0: i32) -> (i32, i32) {
    %c0_i32 = arith.constant 0 : i32
    %c0_i32_0 = arith.constant 0 : i32
    %c0_i32_1 = arith.constant 0 : i32
    return %c0_i32, %c0_i32_0 : i32, i32
  }
  func.func @transform_8(%arg0: i32) -> (i32, i32) {
    %c0_i32 = arith.constant 0 : i32
    %c0_i32_0 = arith.constant 0 : i32
    %c0_i32_1 = arith.constant 0 : i32
    return %c0_i32, %c0_i32_0 : i32, i32
  }
  func.func @transform_9(%arg0: i32) -> (i32, i32) {
    %c0_i32 = arith.constant 0 : i32
    %c0_i32_0 = arith.constant 0 : i32
    return %arg0, %c0_i32 : i32, i32
  }
}

</mosaic_0001>

<bundles_post_ra>
// kernel: _pallas_forward.1
= control target key start
LH: loop header
LB: loop body
LE: loop exit
PB: predicated region body
PF: predicated region fallthrough
CT: control target
= control target key end

     0   :  { %14 = vsyncpa [#allocation3], 0  ;;  %s1386_s0 = inlined_call_operand.hbm [shape: f32[16,100], index: 0, kind: input, shape index: {}]   ;;  %s1387_s1 = inlined_call_operand.hbm [shape: bf16[100,256], index: 1, kind: input, shape index: {}]   ;;  %s1388_s2 = inlined_call_operand.vmem [shape: f32[1,256], index: 2, kind: input, shape index: {}]   ;;  %s1389_s3 = inlined_call_operand.hbm [shape: bf16[256,256], index: 3, kind: input, shape index: {}]   ;;  %s1390_s4 = inlined_call_operand.vmem [shape: f32[1,256], index: 4, kind: input, shape index: {}]   ;;  %s1391_s5 = inlined_call_operand.hbm [shape: bf16[256,128], index: 5, kind: input, shape index: {}]   ;;  %s1392_s6 = inlined_call_operand.vmem [shape: f32[1,128], index: 6, kind: input, shape index: {}]   ;;  %s1393_s7 = inlined_call_operand.hbm [shape: bf16[128,128], index: 7, kind: input, shape index: {}]   ;;  %s1394_s8 = inlined_call_operand.vmem [shape: f32[1,128], index: 8, kind: input, shape index: {}]   ;;  %s1395_s9 = inlined_call_operand.hbm [shape: bf16[16,128], index: 9, kind: output, shape index: {}]  }
   0x1   :  { %15 = vsyncpa [#allocation6], 0 }
   0x2   :  { %16 = vsyncpa [#allocation9], 0 }
   0x3   :  { %17 = vsyncpa [#allocation4], 0  ;;  %s1207_s30 = smov [#allocation5]   ;;  %s1208_s11 = smov [#allocation8]  }
   0x4   :  { %s35_s10 = sshll.u32 %s1207_s30, 4  ;;  %s63_s12 = sshll.u32 %s1208_s11, 4  ;;  %s36_s10 = int_to_ptr.vmem [resolvable:$true] %s35_s10  ;;  %s1270_s12 = int_to_ptr.vmem [resolvable:$true] %s63_s12 }
   0x5   :  { %s1067_s15 = scalar_lea.hbm %s1387_s1, 1664 }
   0x6   :  { %p1068_p0 = scmp.ne.s32.totalorder %s1387_s1, %s1067_s15  ;;  %p1071_p1 = scmp.lt.u32.totalorder %s1067_s15, %s1387_s1 }
   0x8   :  { %p1073_p2 = pnand %p1071_p1, %p1068_p0 }
   0xa   :  { %1076 = shalt.err (!%p1073_p2)
}
   0xb   :  { %s1077_s20 = scalar_lea.vmem %s36_s10, 1664  ;;  %p1082_p4 = scmp.lt.s32.totalorder %s36_s10, %s36_s10 }
   0xc   :  { %p1078_p3 = scmp.ne.s32.totalorder %s36_s10, %s1077_s20  ;;  %p1083_p5 = scmp.lt.s32.totalorder %s1077_s20, %s1077_s20 }
   0xe   :  { %p1084_p6 = por %p1083_p5, %p1082_p4 }
  0x10   :  { %p1085_p7 = pnand %p1084_p6, %p1078_p3 }
  0x12   :  { %1088 = shalt.err (!%p1085_p7)
}
  0x13   :  { %s1209_s21 = smov 128   ;;  %s1210_s22 = smov 8  }
  0x14   :  { %41 = dma.hbm_to_vmem [thread:$0]  %s1387_s1, 1664, %s36_s10, [#allocation6], %s1209_s21, %s1209_s21, %s1210_s22  }
  0x15   :  { %s1089_s27 = scalar_lea.hbm %s1391_s5, 2048 }
  0x16   :  { %p1090_p8 = scmp.ne.s32.totalorder %s1391_s5, %s1089_s27  ;;  %p1093_p9 = scmp.lt.u32.totalorder %s1089_s27, %s1391_s5 }
  0x18   :  { %p1095_p10 = pnand %p1093_p9, %p1090_p8 }
  0x1a   :  { %1098 = shalt.err (!%p1095_p10)
}
  0x1b   :  { %s1099_s13 = scalar_lea.vmem %s1270_s12, 2048  ;;  %p1104_p12 = scmp.lt.s32.totalorder %s1270_s12, %s1270_s12 }
  0x1c   :  { %p1100_p11 = scmp.ne.s32.totalorder %s1270_s12, %s1099_s13  ;;  %p1105_p13 = scmp.lt.s32.totalorder %s1099_s13, %s1099_s13 }
  0x1e   :  { %p1106_p0 = por %p1105_p13, %p1104_p12 }
  0x20   :  { %p1107_p1 = pnand %p1106_p0, %p1100_p11 }
  0x22   :  { %1110 = shalt.err (!%p1107_p1)
}
  0x23   :  { %s1211_s1 = smov 64   ;;  %s1212_s10 = smov 4  }
  0x24   :  { %69 = dma.hbm_to_vmem [thread:$0]  %s1391_s5, 2048, %s1270_s12, [#allocation9], %s1211_s1, %s1211_s1, %s1212_s10  }
  0x25   :  { %s1213_s16 = smov [#allocation2]   ;;  %s1214_s18 = smov [#allocation7]  }
  0x26   :  { %s23_s17 = sshll.u32 %s1213_s16, 4  ;;  %s49_s19 = sshll.u32 %s1214_s18, 4  ;;  %s24_s17 = int_to_ptr.vmem [resolvable:$true] %s23_s17  ;;  %s1307_s19 = int_to_ptr.vmem [resolvable:$true] %s49_s19 }
  0x27   :  { %s1111_s24 = scalar_lea.hbm %s1386_s0, 256 }
  0x28   :  { %p1112_p2 = scmp.ne.s32.totalorder %s1386_s0, %s1111_s24  ;;  %p1115_p3 = scmp.lt.u32.totalorder %s1111_s24, %s1386_s0 }
  0x2a   :  { %p1117_p4 = pnand %p1115_p3, %p1112_p2 }
  0x2c   :  { %1120 = shalt.err (!%p1117_p4)
}
  0x2d   :  { %s1121_s5 = scalar_lea.vmem %s24_s17, 256  ;;  %p1126_p6 = scmp.lt.s32.totalorder %s24_s17, %s24_s17 }
  0x2e   :  { %p1122_p5 = scmp.ne.s32.totalorder %s24_s17, %s1121_s5  ;;  %p1127_p7 = scmp.lt.s32.totalorder %s1121_s5, %s1121_s5 }
  0x30   :  { %p1128_p8 = por %p1127_p7, %p1126_p6 }
  0x32   :  { %p1129_p9 = pnand %p1128_p8, %p1122_p5 }
  0x34   :  { %1132 = shalt.err (!%p1129_p9)
}
  0x35   :  { %29 = dma.hbm_to_vmem [thread:$0]  %s1386_s0, 256, %s24_s17, [#allocation3], %s1209_s21, %s1209_s21, %s1210_s22  }
  0x36   :  { %s1133_s13 = scalar_lea.hbm %s1389_s3, 4096 }
  0x37   :  { %p1134_p10 = scmp.ne.s32.totalorder %s1389_s3, %s1133_s13  ;;  %p1137_p11 = scmp.lt.u32.totalorder %s1133_s13, %s1389_s3 }
  0x39   :  { %p1139_p12 = pnand %p1137_p11, %p1134_p10 }
  0x3b   :  { %1142 = shalt.err (!%p1139_p12)
}
  0x3c   :  { %s1143_s20 = scalar_lea.vmem %s1307_s19, 4096  ;;  %p1148_p0 = scmp.lt.s32.totalorder %s1307_s19, %s1307_s19 }
  0x3d   :  { %p1144_p13 = scmp.ne.s32.totalorder %s1307_s19, %s1143_s20  ;;  %p1149_p1 = scmp.lt.s32.totalorder %s1143_s20, %s1143_s20 }
  0x3f   :  { %p1150_p2 = por %p1149_p1, %p1148_p0 }
  0x41   :  { %p1151_p3 = pnand %p1150_p2, %p1144_p13 }
  0x43   :  { %1154 = shalt.err (!%p1151_p3)
}
  0x44   :  { %55 = dma.hbm_to_vmem [thread:$0]  %s1389_s3, 4096, %s1307_s19, [#allocation6], %s1209_s21, %s1209_s21, %s1210_s22  }
  0x45   :  { %s1215_s23 = smov [#allocation10]   ;;  %s1155_s27 = scalar_lea.hbm %s1393_s7, 1024 }
  0x46   :  { %s77_s24 = sshll.u32 %s1215_s23, 4  ;;  %p1156_p4 = scmp.ne.s32.totalorder %s1393_s7, %s1155_s27  ;;  %s78_s24 = int_to_ptr.vmem [resolvable:$true] %s77_s24 }
  0x47   :  { %p1159_p5 = scmp.lt.u32.totalorder %s1155_s27, %s1393_s7 }
  0x49   :  { %p1161_p6 = pnand %p1159_p5, %p1156_p4 }
  0x4b   :  { %1164 = shalt.err (!%p1161_p6)
}
  0x4c   :  { %s1165_s30 = scalar_lea.vmem %s78_s24, 1024  ;;  %p1170_p8 = scmp.lt.s32.totalorder %s78_s24, %s78_s24 }
  0x4d   :  { %p1166_p7 = scmp.ne.s32.totalorder %s78_s24, %s1165_s30  ;;  %p1171_p9 = scmp.lt.s32.totalorder %s1165_s30, %s1165_s30 }
  0x4f   :  { %p1172_p10 = por %p1171_p9, %p1170_p8 }
  0x51   :  { %p1173_p11 = pnand %p1172_p10, %p1166_p7 }
  0x53   :  { %1176 = shalt.err (!%p1173_p11)
}
  0x54   :  { %83 = dma.hbm_to_vmem [thread:$0]  %s1393_s7, 1024, %s78_s24, [#allocation9], %s1211_s1, %s1211_s1, %s1212_s10  }
  0x55   :  { %1199 = dma.done.wait [#allocation3], 256  }
  0x56   :  { %1200 = vsyncadd [#allocation3], 4294967040 }
  0x57   :  { %1201 = dma.done.wait [#allocation6], 5760  }
  0x58   :  { %1202 = vsyncadd [#allocation6], 4294961536 }
  0x59   :  { %1203 = dma.done.wait [#allocation9], 3072  }
  0x5a   :  { %1204 = vsyncadd [#allocation9], 4294964224  ;;  %v1216_v0 = vmov 0   ;;  %v975_v1 = vld [vmem:[#allocation5 + $0x4] ss:$8 sps:$4 sm:$0xff]   ;;  %vm199_vm0 = vcmask 1041408   ;;  %v120_v63 = vlaneseq }
  0x5b   :  { %238 = vmatprep.mubr.bf16.mxu0 %v1216_v0  ;;  %v977_v2 = vld [vmem:[#allocation5] ss:$8 sps:$4 sm:$0xff]   ;;  %206 = vmatprep.subr.bf16.mxu0 %v975_v1  ;;  %v978_v3 = vld [vmem:[#allocation5 + $0x14] ss:$8 sps:$4 sm:$0xff]   ;;  %v980_v4 = vld [vmem:[#allocation5 + $0x10] ss:$8 sps:$4 sm:$0xff]  }
  0x5c   :  { %207 = vmatpush1.bf16.msra.mxu0 %v977_v2  ;;  %v981_v5 = vld [vmem:[#allocation5 + $0x24] ss:$8 sps:$4 sm:$0xff]   ;;  %v983_v6 = vld [vmem:[#allocation5 + $0x20] ss:$8 sps:$4 sm:$0xff]   ;;  %v984_v7 = vld [vmem:[#allocation5 + $0x34] ss:$8 sps:$4 sm:$0xff]  }
  0x5d   :  { %208 = vmatprep.subr.bf16.mxu0 %v978_v3  ;;  %v995_v8 = vld [vmem:[#allocation7 + $0x4] ss:$8 sps:$4 sm:$0xff]   ;;  %v997_v9 = vld [vmem:[#allocation7] ss:$8 sps:$4 sm:$0xff]   ;;  %v998_v11 = vld [vmem:[#allocation7 + $0x14] ss:$8 sps:$4 sm:$0xff]  }
  0x5e   :  { %v986_v10 = vld [vmem:[#allocation5 + $0x30] ss:$8 sps:$4 sm:$0xff]   ;;  %459 = vmatprep.subr.bf16.mxu1 %v995_v8  ;;  %v987_v12 = vld [vmem:[#allocation5 + $0x44] ss:$8 sps:$4 sm:$0xff]   ;;  %v989_v15 = vld [vmem:[#allocation5 + $0x40] ss:$8 sps:$4 sm:$0xff]  }
  0x5f   :  { %460 = vmatpush1.bf16.msra.mxu1 %v997_v9  ;;  %v1000_v13 = vld [vmem:[#allocation7 + $0x10] ss:$8 sps:$4 sm:$0xff]   ;;  %v1001_v14 = vld [vmem:[#allocation7 + $0x24] ss:$8 sps:$4 sm:$0xff]   ;;  %v1003_v18 = vld [vmem:[#allocation7 + $0x20] ss:$8 sps:$4 sm:$0xff]  }
  0x60   :  { %209 = vmatpush1.bf16.msra.mxu0 %v980_v4  ;;  %461 = vmatprep.subr.bf16.mxu1 %v998_v11  ;;  %v990_v16 = vld [vmem:[#allocation5 + $0x54] ss:$8 sps:$4 sm:$0xff]   ;;  %v117_v17 = vld [vmem:[#allocation5 + $0x60] sm:$0x33]  ;;  %v992_v20 = vld [vmem:[#allocation5 + $0x50] ss:$8 sps:$4 sm:$0xff]  }
  0x61   :  { %210 = vmatprep.subr.bf16.mxu0 %v981_v5  ;;  %v1004_v19 = vld [vmem:[#allocation7 + $0x34] ss:$8 sps:$4 sm:$0xff]   ;;  %v841_v21 = vcombine.high %v117_v17, %v117_v17  ;;  %v840_v22 = vcombine.low %v117_v17, %v117_v17  ;;  %v1006_v23 = vld [vmem:[#allocation7 + $0x30] ss:$8 sps:$4 sm:$0xff]   ;;  %v1007_v24 = vld [vmem:[#allocation7 + $0x44] ss:$8 sps:$4 sm:$0xff]  }
  0x62   :  { %v102_v25 = vld [vmem:[#allocation2] sm:$0xff]  ;;  %v103_v26 = vld [vmem:[#allocation2 + $0x8] sm:$0xff]  ;;  %vm195_vm1 = vcmask 818176   ;;  %v1043_v52 = vld [vmem:[#allocation8 + $0x40] sm:$0xff]   ;;  %v121_v0 = vshrl.u32 %v120_v63, 7  ;;  %vm1218_vm2 = vmmov 0  }
  0x63   :  { %462 = vmatpush1.bf16.msra.mxu1 %v1000_v13  ;;  %v201_v27 = vsel %vm199_vm0, %v840_v22, 0  ;;  %v1009_v28 = vld [vmem:[#allocation7 + $0x40] ss:$8 sps:$4 sm:$0xff]   ;;  %v1010_v29 = vld [vmem:[#allocation7 + $0x54] ss:$8 sps:$4 sm:$0xff]   ;;  %v104_v30 = vpack.c.bf16 %v103_v26, %v102_v25  ;;  %v1217_v25 = vmov 0.0  }
  0x64   :  { %211 = vmatpush1.bf16.msra.mxu0 %v983_v6  ;;  %463 = vmatprep.subr.bf16.mxu1 %v1001_v14  ;;  %v1012_v31 = vld [vmem:[#allocation7 + $0x50] ss:$8 sps:$4 sm:$0xff]   ;;  %v1013_v32 = vld [vmem:[#allocation7 + $0x64] ss:$8 sps:$4 sm:$0xff]   ;;  %v1015_v33 = vld [vmem:[#allocation7 + $0x60] ss:$8 sps:$4 sm:$0xff]  }
  0x65   :  { %212 = vmatprep.subr.bf16.mxu0 %v984_v7  ;;  %v1016_v34 = vld [vmem:[#allocation7 + $0x74] ss:$8 sps:$4 sm:$0xff]   ;;  %v1018_v35 = vld [vmem:[#allocation7 + $0x70] ss:$8 sps:$4 sm:$0xff]   ;;  %v1019_v36 = vld [vmem:[#allocation7 + $0x84] ss:$8 sps:$4 sm:$0xff]  }
  0x66   :  { %v1021_v37 = vld [vmem:[#allocation7 + $0x80] ss:$8 sps:$4 sm:$0xff]   ;;  %v1022_v38 = vld [vmem:[#allocation7 + $0x94] ss:$8 sps:$4 sm:$0xff]   ;;  %v1024_v39 = vld [vmem:[#allocation7 + $0x90] ss:$8 sps:$4 sm:$0xff]  }
  0x67   :  { %464 = vmatpush1.bf16.msra.mxu1 %v1003_v18  ;;  %v1025_v40 = vld [vmem:[#allocation7 + $0xa4] ss:$8 sps:$4 sm:$0xff]   ;;  %v1027_v41 = vld [vmem:[#allocation7 + $0xa0] ss:$8 sps:$4 sm:$0xff]   ;;  %v1028_v42 = vld [vmem:[#allocation7 + $0xb4] ss:$8 sps:$4 sm:$0xff]  }
  0x68   :  { %213 = vmatpush1.bf16.msra.mxu0 %v986_v10  ;;  %465 = vmatprep.subr.bf16.mxu1 %v1004_v19  ;;  %v1030_v43 = vld [vmem:[#allocation7 + $0xb0] ss:$8 sps:$4 sm:$0xff]   ;;  %v1031_v44 = vld [vmem:[#allocation7 + $0xc4] ss:$8 sps:$4 sm:$0xff]   ;;  %v1033_v45 = vld [vmem:[#allocation7 + $0xc0] ss:$8 sps:$4 sm:$0xff]  }
  0x69   :  { %214 = vmatprep.subr.bf16.mxu0 %v987_v12  ;;  %v1034_v46 = vld [vmem:[#allocation7 + $0xd4] ss:$8 sps:$4 sm:$0xff]   ;;  %v1036_v47 = vld [vmem:[#allocation7 + $0xd0] ss:$8 sps:$4 sm:$0xff]   ;;  %v1037_v48 = vld [vmem:[#allocation7 + $0xe4] ss:$8 sps:$4 sm:$0xff]  }
  0x6a   :  { %v1039_v49 = vld [vmem:[#allocation7 + $0xe0] ss:$8 sps:$4 sm:$0xff]   ;;  %v1040_v50 = vld [vmem:[#allocation7 + $0xf4] ss:$8 sps:$4 sm:$0xff]   ;;  %v1042_v51 = vld [vmem:[#allocation7 + $0xf0] ss:$8 sps:$4 sm:$0xff]  }
  0x6b   :  { %466 = vmatpush1.bf16.msra.mxu1 %v1006_v23  ;;  %v1044_v53 = vld [vmem:[#allocation8] sm:$0xff]   ;;  %v1045_v54 = vld [vmem:[#allocation8 + $0x48] sm:$0xff]   ;;  %v1047_v56 = vld [vmem:[#allocation8 + $0x50] sm:$0xff]   ;;  %v122_v1 = vsub.s32 0, %v121_v0  ;;  %v126_v3 = vsub.s32 1, %v121_v0  ;;  %s1219_s15 = smov [#allocation11]  }
  0x6c   :  { %215 = vmatpush1.bf16.msra.mxu0 %v989_v15  ;;  %467 = vmatprep.subr.bf16.mxu1 %v1007_v24  ;;  %v1046_v55 = vld [vmem:[#allocation8 + $0x8] sm:$0xff]   ;;  %v1048_v57 = vld [vmem:[#allocation8 + $0x10] sm:$0xff]   ;;  %v1049_v58 = vld [vmem:[#allocation8 + $0x58] sm:$0xff]  }
  0x6d   :  { %216 = vmatprep.subr.bf16.mxu0 %v990_v16  ;;  %v1050_v59 = vld [vmem:[#allocation8 + $0x18] sm:$0xff]   ;;  %v1051_v60 = vld [vmem:[#allocation8 + $0x60] sm:$0xff]   ;;  %v1053_v62 = vld [vmem:[#allocation8 + $0x68] sm:$0xff]  }
  0x6e   :  { %v1052_v61 = vld [vmem:[#allocation8 + $0x20] sm:$0xff]   ;;  %v118_v2 = vld [vmem:[%s1388_s2] sm:$0x3]  ;;  %v1056_v22 = vld [vmem:[#allocation8 + $0x30] sm:$0xff]  }
  0x6f   :  { %468 = vmatpush1.bf16.msra.mxu1 %v1009_v28  ;;  %v123_v4 = vrot.slane %v118_v2, %v122_v1  ;;  %v127_v5 = vrot.slane %v118_v2, %v126_v3  ;;  %v1057_v23 = vld [vmem:[#allocation8 + $0x78] sm:$0xff]   ;;  %v287_v26 = vld [vmem:[%s1390_s4] sm:$0x3] }
  0x70   :  { %217 = vmatpush1.bf16.msra.mxu0 %v992_v20  ;;  %469 = vmatprep.subr.bf16.mxu1 %v1010_v29  ;;  %v1054_v20 = vld [vmem:[#allocation8 + $0x28] sm:$0xff]   ;;  %v1058_v24 = vld [vmem:[#allocation8 + $0x38] sm:$0xff]   ;;  %v296_v28 = vrot.slane %v287_v26, %v126_v3 }
  0x71   :  { %842 = vmatprep.subr.msk.bf16.mxu0 %vm199_vm0, %v841_v21  ;;  %v1055_v21 = vld [vmem:[#allocation8 + $0x70] sm:$0xff]   ;;  %v893_v63 = vld [vmem:[%s1394_s8] ss:$0 sm:$0xff] }
  0x73   :  { %470 = vmatpush1.bf16.msra.mxu1 %v1012_v31 }
  0x74   :  { %219 = vmatpush1.bf16.msra.mxu0 %v201_v27  ;;  %471 = vmatprep.subr.bf16.mxu1 %v1013_v32  ;;  %v292_v27 = vrot.slane %v287_v26, %v122_v1 }
  0x75   :  { %911 = vmatprep.subr.bf16.mxu0 %v1043_v52  ;;  %v876_v52 = vld [vmem:[%s1392_s6] ss:$0 sm:$0xff]  ;;  %s814_s6 = sshll.u32 %s1219_s15, 4  ;;  %s815_s6 = int_to_ptr.vmem [resolvable:$true] %s814_s6 }
  0x76   :  { %s1177_s16 = scalar_lea.vmem %s815_s6, 128  ;;  %p1182_p13 = scmp.lt.s32.totalorder %s815_s6, %s815_s6 }
  0x77   :  { %843 = vmatmul.mubr.msk.bf16.vlgmr.msra.gmra.mrb[0].mxu0 %vm195_vm1, %v104_v30  ;;  %472 = vmatpush1.bf16.msra.mxu1 %v1015_v33  ;;  %p1178_p12 = scmp.ne.s32.totalorder %s815_s6, %s1177_s16  ;;  %p1183_p0 = scmp.lt.s32.totalorder %s1177_s16, %s1177_s16 }
  0x78   :  { %473 = vmatprep.subr.bf16.mxu1 %v1016_v34  ;;  %912 = vmatpush3.bf16.msra.mxu0 %v1044_v53 }
  0x79   :  { %913 = vmatprep.subr.bf16.mxu0 %v1045_v54  ;;  %p1184_p1 = por %p1183_p0, %p1182_p13 }
  0x7b   :  { %474 = vmatpush1.bf16.msra.mxu1 %v1018_v35  ;;  %p1185_p2 = pnand %p1184_p1, %p1178_p12 }
  0x7c   :  { %475 = vmatprep.subr.bf16.mxu1 %v1019_v36  ;;  %914 = vmatpush3.bf16.msra.mxu0 %v1046_v55 }
  0x7d   :  { %915 = vmatprep.subr.bf16.mxu0 %v1047_v56 }
  0x7f   :  { %476 = vmatpush1.bf16.msra.mxu1 %v1021_v37 }
  0x80   :  { %477 = vmatprep.subr.bf16.mxu1 %v1022_v38  ;;  %916 = vmatpush3.bf16.msra.mxu0 %v1048_v57 }
  0x81   :  { %917 = vmatprep.subr.bf16.mxu0 %v1049_v58 }
  0x83   :  { %478 = vmatpush1.bf16.msra.mxu1 %v1024_v39 }
  0x84   :  { %479 = vmatprep.subr.bf16.mxu1 %v1025_v40  ;;  %918 = vmatpush3.bf16.msra.mxu0 %v1050_v59 }
  0x85   :  { %919 = vmatprep.subr.bf16.mxu0 %v1051_v60 }
  0x87   :  { %480 = vmatpush1.bf16.msra.mxu1 %v1027_v41 }
  0x88   :  { %481 = vmatprep.subr.bf16.mxu1 %v1028_v42  ;;  %920 = vmatpush3.bf16.msra.mxu0 %v1052_v61 }
  0x89   :  { %921 = vmatprep.subr.bf16.mxu0 %v1053_v62 }
  0x8b   :  { %482 = vmatpush1.bf16.msra.mxu1 %v1030_v43  ;;  %v1059_v43 = vld [vmem:[#allocation10] sm:$0xff]  }
  0x8c   :  { %483 = vmatprep.subr.bf16.mxu1 %v1031_v44  ;;  %922 = vmatpush3.bf16.msra.mxu0 %v1054_v20  ;;  %v1060_v44 = vld [vmem:[#allocation10 + $0x8] sm:$0xff]  }
  0x8d   :  { %923 = vmatprep.subr.bf16.mxu0 %v1055_v21 }
  0x8f   :  { %484 = vmatpush1.bf16.msra.mxu1 %v1033_v45  ;;  %v1061_v45 = vld [vmem:[#allocation10 + $0x10] sm:$0xff]  }
  0x90   :  { %485 = vmatprep.subr.bf16.mxu1 %v1034_v46  ;;  %924 = vmatpush3.bf16.msra.mxu0 %v1056_v22  ;;  %v1062_v46 = vld [vmem:[#allocation10 + $0x18] sm:$0xff]  }
  0x91   :  { %925 = vmatprep.subr.bf16.mxu0 %v1057_v23 }
  0x93   :  { %486 = vmatpush1.bf16.msra.mxu1 %v1036_v47  ;;  %v1063_v47 = vld [vmem:[#allocation10 + $0x20] sm:$0xff]  }
  0x94   :  { %487 = vmatprep.subr.bf16.mxu1 %v1037_v48  ;;  %926 = vmatpush3.bf16.msra.mxu0 %v1058_v24  ;;  %v1064_v48 = vld [vmem:[#allocation10 + $0x28] sm:$0xff]  }
  0x95   :  { %942 = vmatprep.subr.bf16.mxu0 %v1217_v25 }
  0x97   :  { %488 = vmatpush1.bf16.msra.mxu1 %v1039_v49  ;;  %v1065_v49 = vld [vmem:[#allocation10 + $0x30] sm:$0xff]  }
  0x98   :  { %489 = vmatprep.subr.bf16.mxu1 %v1040_v50  ;;  %v1066_v50 = vld [vmem:[#allocation10 + $0x38] sm:$0xff]  }
  0x9b   :  { %490 = vmatpush1.bf16.msra.mxu1 %v1042_v51 }
 0x14a   :  { %v240_v6 = vpop.f32.mrb[0].mxu0 }
 0x14b   :  { %v241_v7 = vadd.f32 %v240_v6, %v123_v4  ;;  %v242_v8 = vpop.f32.mrb[1].mxu0 }
 0x14c   :  { %v243_v9 = vadd.f32 %v242_v8, %v127_v5  ;;  %v244_v10 = vpop.f32.mrb[2].mxu0 }
 0x14d   :  { %v245_v11 = vadd.f32 %v244_v10, %v123_v4  ;;  %v246_v12 = vpop.f32.mrb[3].mxu0  ;;  %v249_v14 = vmax.f32 %v241_v7, 0.0 }
 0x14e   :  { %v247_v13 = vadd.f32 %v246_v12, %v127_v5  ;;  %v250_v16 = vmax.f32 %v243_v9, 0.0 }
 0x14f   :  { %v251_v15 = vmax.f32 %v245_v11, 0.0 }
 0x150   :  { %v252_v17 = vmax.f32 %v247_v13, 0.0 }
 0x151   :  { %v253_v18 = vpack.c.bf16 %v251_v15, %v249_v14 }
 0x152   :  { %v254_v19 = vpack.c.bf16 %v252_v17, %v250_v16 }
 0x154   :  { %491 = vmatprep.mubr.bf16.mxu1 %v254_v19 }
 0x155   :  { %492 = vmatmul.mubr.bf16.vlgmr.msra.gmra.mrb[0].mxu1 %v253_v18 }
 0x228   :  { %v493_v29 = vpop.f32.mrb[0].mxu1 }
 0x229   :  { %v494_v30 = vadd.f32 %v493_v29, %v292_v27  ;;  %v495_v31 = vpop.f32.mrb[1].mxu1 }
 0x22a   :  { %v496_v32 = vadd.f32 %v495_v31, %v296_v28  ;;  %v497_v33 = vpop.f32.mrb[2].mxu1 }
 0x22b   :  { %v498_v34 = vadd.f32 %v497_v33, %v292_v27  ;;  %v499_v35 = vpop.f32.mrb[3].mxu1  ;;  %v502_v37 = vmax.f32 %v494_v30, 0.0 }
 0x22c   :  { %v500_v36 = vadd.f32 %v499_v35, %v296_v28  ;;  %v503_v39 = vmax.f32 %v496_v32, 0.0 }
 0x22d   :  { %v504_v38 = vmax.f32 %v498_v34, 0.0 }
 0x22e   :  { %v505_v40 = vmax.f32 %v500_v36, 0.0 }
 0x22f   :  { %v506_v41 = vpack.c.bf16 %v504_v38, %v502_v37 }
 0x230   :  { %v507_v42 = vpack.c.bf16 %v505_v40, %v503_v39 }
 0x232   :  { %675 = vmatprep.mubr.bf16.mxu0 %v507_v42 }
 0x233   :  { %676 = vmatmul.mubr.bf16.vlgmr.msra.gmra.mrb[4].mxu0 %v506_v41 }
 0x234   :  { %943 = vmatpush3.bf16.msra.mxu0 %v1059_v43  ;;  %958 = vmatprep.mubr.msk.bf16.mxu0 %vm1218_vm2, %v1217_v25 }
 0x235   :  { %944 = vmatprep.subr.bf16.mxu0 %v1217_v25 }
 0x238   :  { %945 = vmatpush3.bf16.msra.mxu0 %v1060_v44 }
 0x239   :  { %946 = vmatprep.subr.bf16.mxu0 %v1217_v25 }
 0x23c   :  { %947 = vmatpush3.bf16.msra.mxu0 %v1061_v45 }
 0x23d   :  { %948 = vmatprep.subr.bf16.mxu0 %v1217_v25 }
 0x240   :  { %949 = vmatpush3.bf16.msra.mxu0 %v1062_v46 }
 0x241   :  { %950 = vmatprep.subr.bf16.mxu0 %v1217_v25 }
 0x244   :  { %951 = vmatpush3.bf16.msra.mxu0 %v1063_v47 }
 0x245   :  { %952 = vmatprep.subr.bf16.mxu0 %v1217_v25 }
 0x248   :  { %953 = vmatpush3.bf16.msra.mxu0 %v1064_v48 }
 0x249   :  { %954 = vmatprep.subr.bf16.mxu0 %v1217_v25 }
 0x24c   :  { %955 = vmatpush3.bf16.msra.mxu0 %v1065_v49 }
 0x24d   :  { %956 = vmatprep.subr.bf16.mxu0 %v1217_v25 }
 0x250   :  { %957 = vmatpush3.bf16.msra.mxu0 %v1066_v50 }
 0x306   :  { %v927_v51 = vpop.f32.mrb[4].mxu0 }
 0x307   :  { %v928_v53 = vpop.f32.mrb[5].mxu0 }
 0x308   :  { %v929_v54 = vadd.f32 %v928_v53, %v927_v51  ;;  %v930_v55 = vpop.f32.mrb[6].mxu0 }
 0x309   :  { %v931_v56 = vpop.f32.mrb[7].mxu0 }
 0x30a   :  { %v678_v57 = vadd.f32 %v929_v54, %v876_v52  ;;  %v932_v58 = vadd.f32 %v931_v56, %v930_v55 }
 0x30c   :  { %v681_v59 = vadd.f32 %v932_v58, %v876_v52  ;;  %v684_v60 = vmax.f32 %v678_v57, 0.0 }
 0x30e   :  { %v685_v61 = vmax.f32 %v681_v59, 0.0 }
 0x310   :  { %v686_v62 = vpack.c.bf16 %v685_v61, %v684_v60 }
 0x312   :  { %959 = vmatmul.mubr.bf16.vlgmr.msra.gmra.mrb[8].mxu0 %v686_v62 }
 0x3e5   :  { %v792_v0 = vpop.f32.mrb[8].mxu0 }
 0x3e6   :  { %v960_v1 = vpop.f32.mrb[9].mxu0  ;;  %v793_v3 = vadd.f32 %v893_v63, %v792_v0 }
 0x3e7   :  { %v795_v2 = vpop.f32.mrb[10].mxu0 }
 0x3e8   :  { %v796_v4 = vadd.f32 %v893_v63, %v795_v2  ;;  %v961_v5 = vpop.f32.mrb[11].mxu0 }
 0x3ea   :  { %v909_v6 = vpack.c.bf16 %v796_v4, %v793_v3 }
 0x3ec   :  { %910 = vst [vmem:[#allocation11] sm:$0xff] %v909_v6  }
 0x3ed   :  { %1188 = shalt.err (!%p1185_p2)
}
 0x3ee   :  { %s1189_s20 = scalar_lea.hbm %s1395_s9, 128 }
 0x3ef   :  { %p1190_p3 = scmp.ne.s32.totalorder %s1395_s9, %s1189_s20  ;;  %p1193_p4 = scmp.lt.u32.totalorder %s1189_s20, %s1395_s9 }
 0x3f1   :  { %p1195_p5 = pnand %p1193_p4, %p1190_p3 }
 0x3f3   :  { %1198 = shalt.err (!%p1195_p5)
}
 0x3f4   :  { %820 = dma.vmem_to_hbm [thread:$0]  %s815_s6, 128, %s1395_s9, [#allocation4], %s1211_s1, %s1211_s1, %s1212_s10  }
 0x3f5   :  { %1205 = dma.done.wait [#allocation4], 128  }
 0x3f6   :  { %1206 = vsyncadd [#allocation4], 4294967168 }
 0x3f7   :  { %824 = vsyncpa [#allocation3], 1 }
 0x3f8   :  { %825 = vsyncpa [#allocation6], 1 }
 0x3f9   :  { %826 = vsyncpa [#allocation9], 1 }
 0x3fa   :  { %827 = vsyncpa [#allocation4], 1 }

</bundles_post_ra>
